<compile_context>
chip_gen: v7x
topology: tpu7x:2x2x1
jax: 0.10.0
libtpu: 0.0.40
codegen_flags: <defaults>
</compile_context>

<pallas_src>
import functools

import jax
import jax.numpy as jnp
from jax.experimental import pallas as pl
from jax.experimental.pallas import tpu as pltpu


def _round_up(x: int, m: int) -> int:
    return (x + m - 1) // m * m


def two_layer_kernel(x_ref, w1t_ref, b1_ref, w2t_ref, b2_ref, o_ref):
    # h = relu(x @ W1^T + b1); y = h @ W2^T + b2  (weights pre-transposed,
    # bf16 MXU inputs, f32 accumulation, f32 bias add).
    x = x_ref[...].astype(jnp.bfloat16)                      # (tile_n, D_in)
    h = jnp.dot(x, w1t_ref[...],
                preferred_element_type=jnp.float32)          # (tile_n, H)
    h = jnp.maximum(h + b1_ref[...], 0.0)
    y = jnp.dot(h.astype(jnp.bfloat16), w2t_ref[...],
                preferred_element_type=jnp.float32)          # (tile_n, D_out)
    o_ref[...] = (y + b2_ref[...]).astype(o_ref.dtype)


def init_params(w1, b1, w2, b2):
    """One-time (per-model) weight prep, hoisted out of the per-call path."""
    return {
        "w1t": jnp.asarray(w1).T.astype(jnp.bfloat16),       # (D_in, H)
        "b1": jnp.asarray(b1, jnp.float32).reshape(1, -1),   # (1, H)
        "w2t": jnp.asarray(w2).T.astype(jnp.bfloat16),       # (H, D_out)
        "b2": jnp.asarray(b2, jnp.float32).reshape(1, -1),   # (1, D_out)
    }


@functools.partial(jax.jit, static_argnames=("tile_n",))
def two_layer_net(x, params, *, tile_n: int = 1024):
    """x: (N, D_in) f32; params from init_params. Returns (N, D_out) f32."""
    N, D_in = x.shape
    w1t, b1, w2t, b2 = params["w1t"], params["b1"], params["w2t"], params["b2"]
    H = w1t.shape[1]
    D_out = w2t.shape[1]

    # Keep the grid >= 2 steps when N allows (v7x megacore), tile multiple of 8.
    tile_n = _round_up(max(8, min(tile_n, _round_up(pl.cdiv(N, 2), 8))), 8)
    grid = (pl.cdiv(N, tile_n),)

    # Explicit VMEM budget: double-buffered x/y tiles + resident weights/biases
    # (x2 for default double-buffering) + in-kernel f32/bf16 intermediates.
    vmem_need = (
        2 * tile_n * D_in * 4
        + 2 * tile_n * D_out * 4
        + 2 * 2 * (D_in * H + H * D_out)
        + 2 * 4 * (H + D_out)
        + tile_n * (D_in + 3 * H + D_out) * 4
    )
    vmem_limit = int(min(64 * 1024 * 1024, max(32 * 1024 * 1024, 2 * vmem_need)))

    flops = 2 * N * (D_in * H + H * D_out)
    bytes_accessed = (4 * N * (D_in + D_out)
                      + 2 * (D_in * H + H * D_out) + 4 * (H + D_out))

    return pl.pallas_call(
        two_layer_kernel,
        out_shape=jax.ShapeDtypeStruct((N, D_out), jnp.float32),
        grid_spec=pltpu.PrefetchScalarGridSpec(
            num_scalar_prefetch=0,
            grid=grid,
            in_specs=[
                # x: streamed row tiles; ragged last tile handled by Pallas.
                pl.BlockSpec((tile_n, D_in), lambda i: (i, 0)),
                # Weights / biases: VMEM-resident across all grid steps.
                pl.BlockSpec((D_in, H), lambda i: (0, 0)),
                pl.BlockSpec((1, H), lambda i: (0, 0)),
                pl.BlockSpec((H, D_out), lambda i: (0, 0)),
                pl.BlockSpec((1, D_out), lambda i: (0, 0)),
            ],
            out_specs=pl.BlockSpec((tile_n, D_out), lambda i: (i, 0)),
        ),
        compiler_params=pltpu.CompilerParams(
            dimension_semantics=("parallel",),
            vmem_limit_bytes=vmem_limit,
        ),
        cost_estimate=pl.CostEstimate(
            flops=flops, transcendentals=0, bytes_accessed=bytes_accessed),
    )(x, w1t, b1, w2t, b2)


def _ref(x, w1, b1, w2, b2):
    h = jnp.maximum(x @ w1.T + b1, 0.0)
    return h @ w2.T + b2


if __name__ == "__main__":
    def make_inputs(key, N, D_in, H, D_out):
        kx, kw1, kb1, kw2, kb2 = jax.random.split(key, 5)
        bound1 = 1.0 / (D_in ** 0.5)
        bound2 = 1.0 / (H ** 0.5)
        x = jax.random.normal(kx, (N, D_in), dtype=jnp.float32)
        w1 = jax.random.uniform(kw1, (H, D_in), jnp.float32, -bound1, bound1)
        b1 = jax.random.uniform(kb1, (H,), jnp.float32, -bound1, bound1)
        w2 = jax.random.uniform(kw2, (D_out, H), jnp.float32, -bound2, bound2)
        b2 = jax.random.uniform(kb2, (D_out,), jnp.float32, -bound2, bound2)
        return x, w1, b1, w2, b2

    # Case 1: tiny single-tile batch.
    N, D_in, H, D_out = 8, 64, 128, 32
    x, w1, b1, w2, b2 = make_inputs(jax.random.PRNGKey(0), N, D_in, H, D_out)
    params = init_params(w1, b1, w2, b2)          # one-time weight prep
    y = two_layer_net(x, params)
    jax.block_until_ready(y)
    y_ref = _ref(x, w1, b1, w2, b2)
    assert y.shape == (N, D_out) and y.dtype == jnp.float32
    # bf16 matmul inputs with f32 accumulation -> looser tolerance vs f32 ref.
    assert jnp.allclose(y, y_ref, atol=5e-2, rtol=5e-2), (
        float(jnp.max(jnp.abs(y - y_ref))))

    # Case 2: ragged multi-tile batch (grid of 2 -> exercises the parallel
    # batch axis and the discarded out-of-bounds rows of the last tile).
    N2 = 300
    x2, w12, b12, w22, b22 = make_inputs(jax.random.PRNGKey(1), N2, D_in, H, D_out)
    params2 = init_params(w12, b12, w22, b22)
    y2 = two_layer_net(x2, params2)
    jax.block_until_ready(y2)
    y2_ref = _ref(x2, w12, b12, w22, b22)
    assert y2.shape == (N2, D_out)
    assert jnp.allclose(y2, y2_ref, atol=5e-2, rtol=5e-2), (
        float(jnp.max(jnp.abs(y2 - y2_ref))))

    print("KERNEL_OK")
</pallas_src>

<mosaic_0001>
module attributes {stable_mosaic.version = 11 : i64} {
  func.func @two_layer_kernel(%arg0: i32, %arg1: memref<8x64xf32, #tpu.memory_space<vmem>>, %arg2: memref<64x128xbf16, #tpu.memory_space<vmem>>, %arg3: memref<1x128xf32, #tpu.memory_space<vmem>>, %arg4: memref<128x32xbf16, #tpu.memory_space<vmem>>, %arg5: memref<1x32xf32, #tpu.memory_space<vmem>>, %arg6: memref<8x32xf32, #tpu.memory_space<vmem>>) attributes {dimension_semantics = [#tpu.dimension_semantics<parallel>], iteration_bounds = array<i64: 1>, scalar_prefetch = 0 : i64, scratch_operands = 0 : i64, tpu.core_type = #tpu.core_type<tc>, window_params = [{transform_indices = @transform_0, window_bounds = array<i64: 8, 64>}, {pipeline_mode = #tpu.pipeline_mode<synchronous>, transform_indices = @transform_1, window_bounds = array<i64: 64, 128>}, {pipeline_mode = #tpu.pipeline_mode<synchronous>, transform_indices = @transform_2, window_bounds = array<i64: 1, 128>}, {pipeline_mode = #tpu.pipeline_mode<synchronous>, transform_indices = @transform_3, window_bounds = array<i64: 128, 32>}, {pipeline_mode = #tpu.pipeline_mode<synchronous>, transform_indices = @transform_4, window_bounds = array<i64: 1, 32>}, {transform_indices = @transform_5, window_bounds = array<i64: 8, 32>}]} {
    %c0 = arith.constant 0 : index
    %c0_0 = arith.constant 0 : index
    %0 = vector.load %arg1[%c0, %c0_0] : memref<8x64xf32, #tpu.memory_space<vmem>>, vector<8x64xf32>
    %1 = arith.truncf %0 : vector<8x64xf32> to vector<8x64xbf16>
    %c0_1 = arith.constant 0 : index
    %c0_2 = arith.constant 0 : index
    %2 = vector.load %arg2[%c0_1, %c0_2] : memref<64x128xbf16, #tpu.memory_space<vmem>>, vector<64x128xbf16>
    %cst = arith.constant dense<0.000000e+00> : vector<8x128xf32>
    %3 = tpu.matmul %1, %2, %cst {dimension_numbers = #tpu.dot_dimension_numbers<[1], [0], [0], [1], [0, 0, 1, 1], [], []>} : vector<8x64xbf16>, vector<64x128xbf16>, vector<8x128xf32> -> vector<8x128xf32>
    %c0_3 = arith.constant 0 : index
    %c0_4 = arith.constant 0 : index
    %4 = vector.load %arg3[%c0_3, %c0_4] : memref<1x128xf32, #tpu.memory_space<vmem>>, vector<1x128xf32>
    %5 = vector.broadcast %4 : vector<1x128xf32> to vector<8x128xf32>
    %6 = arith.addf %3, %5 : vector<8x128xf32>
    %cst_5 = arith.constant 0.000000e+00 : f32
    %7 = vector.broadcast %cst_5 : f32 to vector<8x128xf32>
    %8 = arith.maximumf %6, %7 : vector<8x128xf32>
    %9 = arith.truncf %8 : vector<8x128xf32> to vector<8x128xbf16>
    %c0_6 = arith.constant 0 : index
    %c0_7 = arith.constant 0 : index
    %10 = vector.load %arg4[%c0_6, %c0_7] : memref<128x32xbf16, #tpu.memory_space<vmem>>, vector<128x32xbf16>
    %cst_8 = arith.constant dense<0.000000e+00> : vector<8x32xf32>
    %11 = tpu.matmul %9, %10, %cst_8 {dimension_numbers = #tpu.dot_dimension_numbers<[1], [0], [0], [1], [0, 0, 1, 1], [], []>} : vector<8x128xbf16>, vector<128x32xbf16>, vector<8x32xf32> -> vector<8x32xf32>
    %c0_9 = arith.constant 0 : index
    %c0_10 = arith.constant 0 : index
    %12 = vector.load %arg5[%c0_9, %c0_10] : memref<1x32xf32, #tpu.memory_space<vmem>>, vector<1x32xf32>
    %13 = vector.broadcast %12 : vector<1x32xf32> to vector<8x32xf32>
    %14 = arith.addf %11, %13 : vector<8x32xf32>
    %c0_11 = arith.constant 0 : index
    %c0_12 = arith.constant 0 : index
    %15 = vector.load %arg6[%c0_11, %c0_12] : memref<8x32xf32, #tpu.memory_space<vmem>>, vector<8x32xf32>
    tpu.vector_store %arg6[%c0_11, %c0_12], %14 {strides = array<i32>} : memref<8x32xf32, #tpu.memory_space<vmem>>, vector<8x32xf32>,
    return
  }
  func.func @transform_0(%arg0: i32) -> (i32, i32) {
    %c0_i32 = arith.constant 0 : i32
    %c0_i32_0 = arith.constant 0 : i32
    return %arg0, %c0_i32 : i32, i32
  }
  func.func @transform_1(%arg0: i32) -> (i32, i32) {
    %c0_i32 = arith.constant 0 : i32
    %c0_i32_0 = arith.constant 0 : i32
    %c0_i32_1 = arith.constant 0 : i32
    return %c0_i32, %c0_i32_0 : i32, i32
  }
  func.func @transform_2(%arg0: i32) -> (i32, i32) {
    %c0_i32 = arith.constant 0 : i32
    %c0_i32_0 = arith.constant 0 : i32
    %c0_i32_1 = arith.constant 0 : i32
    return %c0_i32, %c0_i32_0 : i32, i32
  }
  func.func @transform_3(%arg0: i32) -> (i32, i32) {
    %c0_i32 = arith.constant 0 : i32
    %c0_i32_0 = arith.constant 0 : i32
    %c0_i32_1 = arith.constant 0 : i32
    return %c0_i32, %c0_i32_0 : i32, i32
  }
  func.func @transform_4(%arg0: i32) -> (i32, i32) {
    %c0_i32 = arith.constant 0 : i32
    %c0_i32_0 = arith.constant 0 : i32
    %c0_i32_1 = arith.constant 0 : i32
    return %c0_i32, %c0_i32_0 : i32, i32
  }
  func.func @transform_5(%arg0: i32) -> (i32, i32) {
    %c0_i32 = arith.constant 0 : i32
    %c0_i32_0 = arith.constant 0 : i32
    return %arg0, %c0_i32 : i32, i32
  }
}

</mosaic_0001>

<bundles_post_ra>
// kernel: two_layer_net.1
= control target key start
LH: loop header
LB: loop body
LE: loop exit
PB: predicated region body
PF: predicated region fallthrough
CT: control target
= control target key end

     0   :  { %v336_v1 = vmov 0.0   ;;  %vm337_vm0 = vmmov 0   ;;  %s426_s0 = inlined_call_operand.vmem [shape: f32[8,64], index: 0, kind: input, shape index: {}]   ;;  %s427_s1 = inlined_call_operand.vmem [shape: bf16[64,128], index: 1, kind: input, shape index: {}]   ;;  %s428_s2 = inlined_call_operand.vmem [shape: f32[1,128], index: 2, kind: input, shape index: {}]   ;;  %s429_s3 = inlined_call_operand.vmem [shape: bf16[128,32], index: 3, kind: input, shape index: {}]   ;;  %s430_s4 = inlined_call_operand.vmem [shape: f32[1,32], index: 4, kind: input, shape index: {}]   ;;  %s431_s5 = inlined_call_operand.hbm [shape: f32[8,32], index: 5, kind: output, shape index: {}]  }
   0x1   :  { %v300_v0 = vld [vmem:[%s427_s1] sm:$0xff]   ;;  %265 = vmatprep.subr.bf16.mxu0 %v336_v1  ;;  %277 = vmatprep.subr.bf16.mxu1 %v336_v1  ;;  %v301_v2 = vld [vmem:[%s427_s1 + $0x8] sm:$0xff]   ;;  %v302_v4 = vld [vmem:[%s427_s1 + $0x10] sm:$0xff]  }
   0x2   :  { %266 = vmatpush3.bf16.msra.mxu0 %v300_v0  ;;  %273 = vmatprep.mubr.msk.bf16.mxu0 %vm337_vm0, %v336_v1  ;;  %v304_v3 = vld [vmem:[%s429_s3] sm:$0xff]   ;;  %v305_v5 = vld [vmem:[%s429_s3 + $0x8] sm:$0xff]   ;;  %v303_v6 = vld [vmem:[%s427_s1 + $0x18] sm:$0xff]  }
   0x3   :  { %267 = vmatprep.subr.bf16.mxu0 %v336_v1  ;;  %293 = vmatprep.mubr.msk.bf16.mxu1 %vm337_vm0, %v336_v1  ;;  %v22_v7 = vld [vmem:[%s426_s0] sm:$0xff]  ;;  %v306_v8 = vld [vmem:[%s429_s3 + $0x10] sm:$0xff]  }
   0x4   :  { %278 = vmatpush3.bf16.msra.mxu1 %v304_v3 }
   0x5   :  { %279 = vmatprep.subr.bf16.mxu1 %v336_v1 }
   0x6   :  { %268 = vmatpush3.bf16.msra.mxu0 %v301_v2 }
   0x7   :  { %269 = vmatprep.subr.bf16.mxu0 %v336_v1 }
   0x8   :  { %280 = vmatpush3.bf16.msra.mxu1 %v305_v5 }
   0x9   :  { %281 = vmatprep.subr.bf16.mxu1 %v336_v1 }
   0xa   :  { %270 = vmatpush3.bf16.msra.mxu0 %v302_v4 }
   0xb   :  { %271 = vmatprep.subr.bf16.mxu0 %v336_v1 }
   0xc   :  { %10 = vsyncpa [#allocation3], 0  ;;  %v23_v9 = vpack.c.bf16 %v22_v7, %v22_v7  ;;  %vm63_vm1 = vcmask 523264   ;;  %282 = vmatpush3.bf16.msra.mxu1 %v306_v8  ;;  %v307_v10 = vld [vmem:[%s429_s3 + $0x18] sm:$0xff]   ;;  %v308_v11 = vld [vmem:[%s429_s3 + $0x20] sm:$0xff]   ;;  %s338_s21 = smov [#allocation2]  }
   0xd   :  { %283 = vmatprep.subr.bf16.mxu1 %v336_v1  ;;  %v309_v12 = vld [vmem:[%s429_s3 + $0x28] sm:$0xff]   ;;  %v310_v13 = vld [vmem:[%s429_s3 + $0x30] sm:$0xff]   ;;  %v311_v14 = vld [vmem:[%s429_s3 + $0x38] sm:$0xff]   ;;  %s228_s22 = sshll.u32 %s338_s21, 4  ;;  %vm220_vm2 = vcmask 261120   ;;  %s229_s22 = int_to_ptr.vmem [resolvable:$true] %s228_s22 }
   0xe   :  { %272 = vmatpush3.bf16.msra.mxu0 %v303_v6  ;;  %v236_v15 = vld [vmem:[%s428_s2] ss:$0 sm:$0xff]  ;;  %s312_s2 = scalar_lea.vmem %s229_s22, 128  ;;  %p317_p1 = scmp.lt.s32.totalorder %s229_s22, %s229_s22 }
   0xf   :  { %v242_v23 = vld [vmem:[%s430_s4] ss:$0 sm:$0xff]  ;;  %p313_p0 = scmp.ne.s32.totalorder %s229_s22, %s312_s2  ;;  %p318_p2 = scmp.lt.s32.totalorder %s312_s2, %s312_s2 }
  0x10   :  { %284 = vmatpush3.bf16.msra.mxu1 %v307_v10 }
  0x11   :  { %274 = vmatmul.mubr.msk.bf16.vlgmr.msra.gmra.mrb[0].mxu0 %vm63_vm1, %v23_v9  ;;  %285 = vmatprep.subr.bf16.mxu1 %v336_v1  ;;  %p319_p3 = por %p318_p2, %p317_p1 }
  0x13   :  { %p320_p4 = pnand %p319_p3, %p313_p0 }
  0x14   :  { %286 = vmatpush3.bf16.msra.mxu1 %v308_v11 }
  0x15   :  { %287 = vmatprep.subr.bf16.mxu1 %v336_v1 }
  0x18   :  { %288 = vmatpush3.bf16.msra.mxu1 %v309_v12 }
  0x19   :  { %289 = vmatprep.subr.bf16.mxu1 %v336_v1 }
  0x1c   :  { %290 = vmatpush3.bf16.msra.mxu1 %v310_v13 }
  0x1d   :  { %291 = vmatprep.subr.bf16.mxu1 %v336_v1 }
  0x20   :  { %292 = vmatpush3.bf16.msra.mxu1 %v311_v14 }
  0xe4   :  { %v101_v16 = vpop.f32.mrb[0].mxu0 }
  0xe5   :  { %v102_v17 = vadd.f32 %v236_v15, %v101_v16  ;;  %v275_v18 = vpop.f32.mrb[1].mxu0 }
  0xe6   :  { %v104_v19 = vpop.f32.mrb[2].mxu0 }
  0xe7   :  { %v107_v20 = vmax.f32 %v102_v17, 0.0  ;;  %v276_v21 = vpop.f32.mrb[3].mxu0 }
  0xe9   :  { %v108_v22 = vpack.c.bf16 %v107_v20, %v107_v20 }
  0xeb   :  { %294 = vmatmul.mubr.bf16.vlgmr.msra.gmra.mrb[0].mxu1 %v108_v22 }
 0x1be   :  { %v214_v24 = vpop.f32.mrb[0].mxu1 }
 0x1bf   :  { %v215_v25 = vadd.f32 %v242_v23, %v214_v24  ;;  %v295_v26 = vpop.f32.mrb[1].mxu1 }
 0x1c0   :  { %v217_v27 = vpop.f32.mrb[2].mxu1 }
 0x1c1   :  { %v296_v28 = vpop.f32.mrb[3].mxu1  ;;  %221 = vst.msk [vmem:[#allocation2] sm:$0xff] %vm220_vm2, %v215_v25 }
 0x1c2   :  { %323 = shalt.err (!%p320_p4)
}
 0x1c3   :  { %s324_s4 = scalar_lea.hbm %s431_s5, 128 }
 0x1c4   :  { %p325_p5 = scmp.ne.s32.totalorder %s431_s5, %s324_s4  ;;  %p328_p6 = scmp.lt.u32.totalorder %s324_s4, %s431_s5 }
 0x1c6   :  { %p330_p7 = pnand %p328_p6, %p325_p5 }
 0x1c8   :  { %333 = shalt.err (!%p330_p7)
}
 0x1c9   :  { %231 = dma.vmem_to_hbm [thread:$0]  %s229_s22, 128, %s431_s5, [#allocation3]  }
 0x1ca   :  { %334 = dma.done.wait [#allocation3], 128  }
 0x1cb   :  { %335 = vsyncadd [#allocation3], 4294967168 }
 0x1cc   :  { %235 = vsyncpa [#allocation3], 1 }

</bundles_post_ra>
